<compile_context>
chip_gen: v7x
topology: tpu7x:2x2x1
jax: 0.10.0
libtpu: 0.0.40
codegen_flags: <defaults>
</compile_context>

<pallas_src>
import functools

import jax
import jax.numpy as jnp
from jax.experimental import pallas as pl
from jax.experimental.pallas import tpu as pltpu


def _round_up(x, m):
    return (x + m - 1) // m * m


# -----------------------------------------------------------------------------
# Kernel: one launch == the whole T-step decode.
# -----------------------------------------------------------------------------
def _fused_decoder_kernel(T, H, V,
                          tokens_ref,                       # SMEM (T,) int32
                          gi_tab_ref, h0_ref, wh_ref, bh_ref,
                          wo_ref, bo_ref,                   # VMEM-resident params
                          logp_ref, hlast_ref):             # outputs
    Vtab = gi_tab_ref.shape[0]

    # ---- Gather the precomputed input-gate rows (W_i x + b_i) for all T
    # tokens at once via a one-hot matmul (avoids per-step HBM gathers and
    # hoists the non-recurrent half of the gate math out of the recurrence).
    col = jax.lax.broadcasted_iota(jnp.int32, (1, Vtab), 1)
    onehot = jnp.concatenate(
        [(col == tokens_ref[t]).astype(jnp.float32) for t in range(T)],
        axis=0)                                                        # (T, Vtab)
    gi_all = jnp.dot(onehot, gi_tab_ref[...],
                     preferred_element_type=jnp.float32)               # (T, Gp)

    wh = wh_ref[...]                                                   # (H, Gp)
    bh = bh_ref[...]                                                   # (1, Gp)
    h = h0_ref[...]                                                    # (1, H)

    # ---- Fully unrolled recurrence: only h @ W_h stays on the serial chain.
    h_rows = []
    for t in range(T):
        gh = jnp.dot(h, wh, preferred_element_type=jnp.float32) + bh   # (1, Gp)
        gi = gi_all[t:t + 1, :]                                        # (1, Gp)
        rz = jax.nn.sigmoid(gi[:, :2 * H] + gh[:, :2 * H])
        r = rz[:, :H]
        z = rz[:, H:2 * H]
        n = jnp.tanh(gi[:, 2 * H:3 * H] + r * gh[:, 2 * H:3 * H])
        h = (1.0 - z) * n + z * h
        h_rows.append(h)

    # ---- Batched output projection + log_softmax, one dense store.
    h_all = jnp.concatenate(h_rows, axis=0)                            # (T, H)
    logits = jnp.dot(h_all, wo_ref[...],
                     preferred_element_type=jnp.float32) + bo_ref[...]  # (T, Vp)
    lane = jax.lax.broadcasted_iota(jnp.int32, logits.shape, 1)
    logits = jnp.where(lane < V, logits, jnp.float32(-1e30))
    m = jnp.max(logits, axis=-1, keepdims=True)
    lse = m + jnp.log(jnp.sum(jnp.exp(logits - m), axis=-1, keepdims=True))
    logp_ref[...] = (logits - lse).astype(logp_ref.dtype)
    hlast_ref[...] = h.astype(hlast_ref.dtype)


# -----------------------------------------------------------------------------
# One-time parameter packing: fold embedding into the input-gate weights,
# transpose, lane-pad to 128.
# -----------------------------------------------------------------------------
def prepare_decoder(params):
    H = params["emb"].shape[1]
    V = params["w_out"].shape[0]
    G = 3 * H
    Gp = _round_up(G, 128)
    Vp = _round_up(V, 128)

    emb = params["emb"].astype(jnp.float32)
    w_ih = params["w_ih"].astype(jnp.float32)        # (3H, H), PyTorch order r,z,n
    w_hh = params["w_hh"].astype(jnp.float32)        # (3H, H)
    b_ih = params["b_ih"].astype(jnp.float32)        # (3H,)
    b_hh = params["b_hh"].astype(jnp.float32)        # (3H,)

    # Per-vocab-entry input gates: GI_table[v] = emb[v] @ W_i^T + b_i.
    # (Eval-mode dropout is the identity, so this fold is exact.)
    gi_tab = emb @ w_ih.T + b_ih                                       # (V, 3H)
    gi_tab = jnp.pad(gi_tab, ((0, 0), (0, Gp - G)))                    # (V, Gp)

    wh = jnp.pad(w_hh.T, ((0, 0), (0, Gp - G)))                        # (H, Gp)
    bh = jnp.pad(b_hh, (0, Gp - G)).reshape(1, Gp)                     # (1, Gp)

    wo = jnp.pad(params["w_out"].astype(jnp.float32).T,
                 ((0, 0), (0, Vp - V)))                                # (H, Vp)
    bo = jnp.pad(params["b_out"].astype(jnp.float32),
                 (0, Vp - V)).reshape(1, Vp)                           # (1, Vp)

    return {"gi_tab": gi_tab, "wh": wh, "bh": bh, "wo": wo, "bo": bo,
            "H": H, "V": V, "Gp": Gp, "Vp": Vp}


# -----------------------------------------------------------------------------
# Fused multi-step decode: tokens (T,) -> (log_probs (T, V), hidden (1,1,H))
# -----------------------------------------------------------------------------
def word2pron_kr_decode(packed, tokens, hidden0):
    H, V, Gp, Vp = packed["H"], packed["V"], packed["Gp"], packed["Vp"]
    T = int(tokens.shape[0])
    tokens = tokens.astype(jnp.int32)
    h0 = hidden0.reshape(1, H).astype(jnp.float32)

    kernel = functools.partial(_fused_decoder_kernel, T, H, V)

    grid_spec = pltpu.PrefetchScalarGridSpec(
        num_scalar_prefetch=1,           # tokens -> SMEM
        grid=(1,),                       # single step; whole decode runs in-kernel
        in_specs=[
            pl.BlockSpec(packed["gi_tab"].shape, lambda i, toks: (0, 0)),
            pl.BlockSpec((1, H), lambda i, toks: (0, 0)),
            pl.BlockSpec(packed["wh"].shape, lambda i, toks: (0, 0)),
            pl.BlockSpec((1, Gp), lambda i, toks: (0, 0)),
            pl.BlockSpec(packed["wo"].shape, lambda i, toks: (0, 0)),
            pl.BlockSpec((1, Vp), lambda i, toks: (0, 0)),
        ],
        out_specs=(
            pl.BlockSpec((T, Vp), lambda i, toks: (0, 0)),   # all log-probs, one store
            pl.BlockSpec((1, H), lambda i, toks: (0, 0)),    # final hidden
        ),
    )

    logp_p, h_last = pl.pallas_call(
        kernel,
        grid_spec=grid_spec,
        out_shape=(
            jax.ShapeDtypeStruct((T, Vp), jnp.float32),
            jax.ShapeDtypeStruct((1, H), jnp.float32),
        ),
        compiler_params=pltpu.CompilerParams(
            dimension_semantics=("arbitrary",)),
    )(tokens, packed["gi_tab"], h0, packed["wh"], packed["bh"],
      packed["wo"], packed["bo"])

    return logp_p[:, :V], h_last.reshape(1, 1, H)


def word2pron_kr_decoder_step(packed, token_idx, hidden):
    """Single-step API matching the PyTorch module's forward signature."""
    logp, h = word2pron_kr_decode(packed, jnp.reshape(token_idx, (1,)), hidden)
    return logp, h


# -----------------------------------------------------------------------------
# Parameters + pure-JAX reference
# -----------------------------------------------------------------------------
def make_params(output_size, hidden_size, key):
    H, V = hidden_size, output_size
    k = jax.random.split(key, 7)
    bound = 1.0 / jnp.sqrt(jnp.float32(H))
    u = lambda kk, shape: jax.random.uniform(kk, shape, jnp.float32, -bound, bound)
    return {
        "emb": jax.random.normal(k[0], (V, H), jnp.float32),   # nn.Embedding ~ N(0,1)
        "w_ih": u(k[1], (3 * H, H)),
        "w_hh": u(k[2], (3 * H, H)),
        "b_ih": u(k[3], (3 * H,)),
        "b_hh": u(k[4], (3 * H,)),
        "w_out": u(k[5], (V, H)),
        "b_out": u(k[6], (V,)),
    }


def _reference_step(params, token_idx, hidden):
    H = params["emb"].shape[1]
    x = params["emb"][token_idx].reshape(1, H)
    h = hidden.reshape(1, H)
    gi = x @ params["w_ih"].T + params["b_ih"]
    gh = h @ params["w_hh"].T + params["b_hh"]
    r = jax.nn.sigmoid(gi[:, :H] + gh[:, :H])
    z = jax.nn.sigmoid(gi[:, H:2 * H] + gh[:, H:2 * H])
    n = jnp.tanh(gi[:, 2 * H:] + r * gh[:, 2 * H:])
    h_new = (1.0 - z) * n + z * h
    logits = h_new @ params["w_out"].T + params["b_out"]
    return jax.nn.log_softmax(logits, axis=1), h_new.reshape(1, 1, H)


if __name__ == "__main__":
    OUTPUT_SIZE = 48   # vocab of pronunciation symbols
    HIDDEN_SIZE = 32
    T = 8              # decode steps fused into one kernel launch

    root = jax.random.PRNGKey(0)
    kp, kt = jax.random.split(root)
    params = make_params(OUTPUT_SIZE, HIDDEN_SIZE, kp)
    packed = prepare_decoder(params)

    tokens = jax.random.randint(kt, (T,), 0, OUTPUT_SIZE, jnp.int32)
    hidden0 = jnp.zeros((1, 1, HIDDEN_SIZE), jnp.float32)   # initHidden()

    logp, hidden_T = word2pron_kr_decode(packed, tokens, hidden0)
    logp = jax.block_until_ready(logp)
    hidden_T = jax.block_until_ready(hidden_T)

    # Reference: apply the single-step module forward T times.
    ref_logps = []
    h = hidden0
    for t in range(T):
        lp, h = _reference_step(params, tokens[t], h)
        ref_logps.append(lp)
    ref_logp = jnp.concatenate(ref_logps, axis=0)

    assert logp.shape == (T, OUTPUT_SIZE) and hidden_T.shape == (1, 1, HIDDEN_SIZE)
    assert jnp.allclose(logp, ref_logp, atol=1e-4, rtol=1e-4)
    assert jnp.allclose(hidden_T, h, atol=1e-4, rtol=1e-4)
    assert jnp.allclose(jnp.sum(jnp.exp(logp), axis=1), 1.0, atol=1e-4)

    # Single-step API (module-equivalent forward) also works.
    lp1, h1 = word2pron_kr_decoder_step(packed, jnp.int32(5), hidden0)
    ref_lp1, ref_h1 = _reference_step(params, jnp.int32(5), hidden0)
    assert jnp.allclose(jax.block_until_ready(lp1), ref_lp1, atol=1e-4, rtol=1e-4)
    assert jnp.allclose(h1, ref_h1, atol=1e-4, rtol=1e-4)

    print("KERNEL_OK")
</pallas_src>

<mosaic_0001>
module attributes {stable_mosaic.version = 11 : i64} {
  func.func @_fused_decoder_kernel(%arg0: i32, %arg1: memref<8xi32, #tpu.memory_space<smem>>, %arg2: memref<48x128xf32, #tpu.memory_space<vmem>>, %arg3: memref<1x32xf32, #tpu.memory_space<vmem>>, %arg4: memref<32x128xf32, #tpu.memory_space<vmem>>, %arg5: memref<1x128xf32, #tpu.memory_space<vmem>>, %arg6: memref<32x128xf32, #tpu.memory_space<vmem>>, %arg7: memref<1x128xf32, #tpu.memory_space<vmem>>, %arg8: memref<8x128xf32, #tpu.memory_space<vmem>>, %arg9: memref<1x32xf32, #tpu.memory_space<vmem>>) attributes {dimension_semantics = [#tpu.dimension_semantics<arbitrary>], iteration_bounds = array<i64: 1>, scalar_prefetch = 1 : i64, scratch_operands = 0 : i64, tpu.core_type = #tpu.core_type<tc>, window_params = [{pipeline_mode = #tpu.pipeline_mode<synchronous>, transform_indices = @transform_0, window_bounds = array<i64: 48, 128>}, {pipeline_mode = #tpu.pipeline_mode<synchronous>, transform_indices = @transform_1, window_bounds = array<i64: 1, 32>}, {pipeline_mode = #tpu.pipeline_mode<synchronous>, transform_indices = @transform_2, window_bounds = array<i64: 32, 128>}, {pipeline_mode = #tpu.pipeline_mode<synchronous>, transform_indices = @transform_3, window_bounds = array<i64: 1, 128>}, {pipeline_mode = #tpu.pipeline_mode<synchronous>, transform_indices = @transform_4, window_bounds = array<i64: 32, 128>}, {pipeline_mode = #tpu.pipeline_mode<synchronous>, transform_indices = @transform_5, window_bounds = array<i64: 1, 128>}, {pipeline_mode = #tpu.pipeline_mode<synchronous>, transform_indices = @transform_6, window_bounds = array<i64: 8, 128>}, {pipeline_mode = #tpu.pipeline_mode<synchronous>, transform_indices = @transform_7, window_bounds = array<i64: 1, 32>}]} {
    %0 = tpu.iota {dimensions = array<i32: 1>} : vector<1x48xi32>
    %c0 = arith.constant 0 : index
    %1 = memref.load %arg1[%c0] : memref<8xi32, #tpu.memory_space<smem>>
    %2 = vector.broadcast %1 : i32 to vector<1x48xi32>
    %3 = arith.cmpi eq, %0, %2 : vector<1x48xi32>
    %4 = arith.extui %3 : vector<1x48xi1> to vector<1x48xi32>
    %5 = arith.sitofp %4 : vector<1x48xi32> to vector<1x48xf32>
    %c1 = arith.constant 1 : index
    %6 = memref.load %arg1[%c1] : memref<8xi32, #tpu.memory_space<smem>>
    %7 = vector.broadcast %6 : i32 to vector<1x48xi32>
    %8 = arith.cmpi eq, %0, %7 : vector<1x48xi32>
    %9 = arith.extui %8 : vector<1x48xi1> to vector<1x48xi32>
    %10 = arith.sitofp %9 : vector<1x48xi32> to vector<1x48xf32>
    %c2 = arith.constant 2 : index
    %11 = memref.load %arg1[%c2] : memref<8xi32, #tpu.memory_space<smem>>
    %12 = vector.broadcast %11 : i32 to vector<1x48xi32>
    %13 = arith.cmpi eq, %0, %12 : vector<1x48xi32>
    %14 = arith.extui %13 : vector<1x48xi1> to vector<1x48xi32>
    %15 = arith.sitofp %14 : vector<1x48xi32> to vector<1x48xf32>
    %c3 = arith.constant 3 : index
    %16 = memref.load %arg1[%c3] : memref<8xi32, #tpu.memory_space<smem>>
    %17 = vector.broadcast %16 : i32 to vector<1x48xi32>
    %18 = arith.cmpi eq, %0, %17 : vector<1x48xi32>
    %19 = arith.extui %18 : vector<1x48xi1> to vector<1x48xi32>
    %20 = arith.sitofp %19 : vector<1x48xi32> to vector<1x48xf32>
    %c4 = arith.constant 4 : index
    %21 = memref.load %arg1[%c4] : memref<8xi32, #tpu.memory_space<smem>>
    %22 = vector.broadcast %21 : i32 to vector<1x48xi32>
    %23 = arith.cmpi eq, %0, %22 : vector<1x48xi32>
    %24 = arith.extui %23 : vector<1x48xi1> to vector<1x48xi32>
    %25 = arith.sitofp %24 : vector<1x48xi32> to vector<1x48xf32>
    %c5 = arith.constant 5 : index
    %26 = memref.load %arg1[%c5] : memref<8xi32, #tpu.memory_space<smem>>
    %27 = vector.broadcast %26 : i32 to vector<1x48xi32>
    %28 = arith.cmpi eq, %0, %27 : vector<1x48xi32>
    %29 = arith.extui %28 : vector<1x48xi1> to vector<1x48xi32>
    %30 = arith.sitofp %29 : vector<1x48xi32> to vector<1x48xf32>
    %c6 = arith.constant 6 : index
    %31 = memref.load %arg1[%c6] : memref<8xi32, #tpu.memory_space<smem>>
    %32 = vector.broadcast %31 : i32 to vector<1x48xi32>
    %33 = arith.cmpi eq, %0, %32 : vector<1x48xi32>
    %34 = arith.extui %33 : vector<1x48xi1> to vector<1x48xi32>
    %35 = arith.sitofp %34 : vector<1x48xi32> to vector<1x48xf32>
    %c7 = arith.constant 7 : index
    %36 = memref.load %arg1[%c7] : memref<8xi32, #tpu.memory_space<smem>>
    %37 = vector.broadcast %36 : i32 to vector<1x48xi32>
    %38 = arith.cmpi eq, %0, %37 : vector<1x48xi32>
    %39 = arith.extui %38 : vector<1x48xi1> to vector<1x48xi32>
    %40 = arith.sitofp %39 : vector<1x48xi32> to vector<1x48xf32>
    %41 = tpu.concatenate %5, %10, %15, %20, %25, %30, %35, %40 in 0 : vector<1x48xf32>, vector<1x48xf32>, vector<1x48xf32>, vector<1x48xf32>, vector<1x48xf32>, vector<1x48xf32>, vector<1x48xf32>, vector<1x48xf32> -> vector<8x48xf32>
    %c0_0 = arith.constant 0 : index
    %c0_1 = arith.constant 0 : index
    %42 = vector.load %arg2[%c0_0, %c0_1] : memref<48x128xf32, #tpu.memory_space<vmem>>, vector<48x128xf32>
    %cst = arith.constant dense<0.000000e+00> : vector<8x128xf32>
    %43 = tpu.matmul %41, %42, %cst {dimension_numbers = #tpu.dot_dimension_numbers<[1], [0], [0], [1], [0, 0, 1, 1], [], []>} : vector<8x48xf32>, vector<48x128xf32>, vector<8x128xf32> -> vector<8x128xf32>
    %c0_2 = arith.constant 0 : index
    %c0_3 = arith.constant 0 : index
    %44 = vector.load %arg4[%c0_2, %c0_3] : memref<32x128xf32, #tpu.memory_space<vmem>>, vector<32x128xf32>
    %c0_4 = arith.constant 0 : index
    %c0_5 = arith.constant 0 : index
    %45 = vector.load %arg5[%c0_4, %c0_5] : memref<1x128xf32, #tpu.memory_space<vmem>>, vector<1x128xf32>
    %c0_6 = arith.constant 0 : index
    %c0_7 = arith.constant 0 : index
    %46 = vector.load %arg3[%c0_6, %c0_7] : memref<1x32xf32, #tpu.memory_space<vmem>>, vector<1x32xf32>
    %cst_8 = arith.constant dense<0.000000e+00> : vector<1x128xf32>
    %47 = tpu.matmul %46, %44, %cst_8 {dimension_numbers = #tpu.dot_dimension_numbers<[1], [0], [0], [1], [0, 0, 1, 1], [], []>} : vector<1x32xf32>, vector<32x128xf32>, vector<1x128xf32> -> vector<1x128xf32>
    %48 = arith.addf %47, %45 : vector<1x128xf32>
    %49 = vector.extract_strided_slice %43 {offsets = [0, 0], sizes = [1, 128], strides = [1, 1]} : vector<8x128xf32> to vector<1x128xf32>
    %50 = vector.extract_strided_slice %49 {offsets = [0, 0], sizes = [1, 64], strides = [1, 1]} : vector<1x128xf32> to vector<1x64xf32>
    %51 = vector.extract_strided_slice %48 {offsets = [0, 0], sizes = [1, 64], strides = [1, 1]} : vector<1x128xf32> to vector<1x64xf32>
    %52 = arith.addf %50, %51 : vector<1x64xf32>
    %53 = arith.negf %52 : vector<1x64xf32>
    %54 = math.exp %53 : vector<1x64xf32>
    %cst_9 = arith.constant 1.000000e+00 : f32
    %55 = vector.broadcast %cst_9 : f32 to vector<1x64xf32>
    %56 = arith.addf %55, %54 : vector<1x64xf32>
    %57 = arith.divf %55, %56 : vector<1x64xf32>
    %58 = vector.extract_strided_slice %57 {offsets = [0, 0], sizes = [1, 32], strides = [1, 1]} : vector<1x64xf32> to vector<1x32xf32>
    %59 = vector.extract_strided_slice %57 {offsets = [0, 32], sizes = [1, 32], strides = [1, 1]} : vector<1x64xf32> to vector<1x32xf32>
    %60 = vector.extract_strided_slice %49 {offsets = [0, 64], sizes = [1, 32], strides = [1, 1]} : vector<1x128xf32> to vector<1x32xf32>
    %61 = vector.extract_strided_slice %48 {offsets = [0, 64], sizes = [1, 32], strides = [1, 1]} : vector<1x128xf32> to vector<1x32xf32>
    %62 = arith.mulf %58, %61 : vector<1x32xf32>
    %63 = arith.addf %60, %62 : vector<1x32xf32>
    %64 = math.tanh %63 : vector<1x32xf32>
    %cst_10 = arith.constant 1.000000e+00 : f32
    %65 = vector.broadcast %cst_10 : f32 to vector<1x32xf32>
    %66 = arith.subf %65, %59 : vector<1x32xf32>
    %67 = arith.mulf %66, %64 : vector<1x32xf32>
    %68 = arith.mulf %59, %46 : vector<1x32xf32>
    %69 = arith.addf %67, %68 : vector<1x32xf32>
    %cst_11 = arith.constant dense<0.000000e+00> : vector<1x128xf32>
    %70 = tpu.matmul %69, %44, %cst_11 {dimension_numbers = #tpu.dot_dimension_numbers<[1], [0], [0], [1], [0, 0, 1, 1], [], []>} : vector<1x32xf32>, vector<32x128xf32>, vector<1x128xf32> -> vector<1x128xf32>
    %71 = arith.addf %70, %45 : vector<1x128xf32>
    %72 = vector.extract_strided_slice %43 {offsets = [1, 0], sizes = [1, 128], strides = [1, 1]} : vector<8x128xf32> to vector<1x128xf32>
    %73 = vector.extract_strided_slice %72 {offsets = [0, 0], sizes = [1, 64], strides = [1, 1]} : vector<1x128xf32> to vector<1x64xf32>
    %74 = vector.extract_strided_slice %71 {offsets = [0, 0], sizes = [1, 64], strides = [1, 1]} : vector<1x128xf32> to vector<1x64xf32>
    %75 = arith.addf %73, %74 : vector<1x64xf32>
    %76 = arith.negf %75 : vector<1x64xf32>
    %77 = math.exp %76 : vector<1x64xf32>
    %cst_12 = arith.constant 1.000000e+00 : f32
    %78 = vector.broadcast %cst_12 : f32 to vector<1x64xf32>
    %79 = arith.addf %78, %77 : vector<1x64xf32>
    %80 = arith.divf %78, %79 : vector<1x64xf32>
    %81 = vector.extract_strided_slice %80 {offsets = [0, 0], sizes = [1, 32], strides = [1, 1]} : vector<1x64xf32> to vector<1x32xf32>
    %82 = vector.extract_strided_slice %80 {offsets = [0, 32], sizes = [1, 32], strides = [1, 1]} : vector<1x64xf32> to vector<1x32xf32>
    %83 = vector.extract_strided_slice %72 {offsets = [0, 64], sizes = [1, 32], strides = [1, 1]} : vector<1x128xf32> to vector<1x32xf32>
    %84 = vector.extract_strided_slice %71 {offsets = [0, 64], sizes = [1, 32], strides = [1, 1]} : vector<1x128xf32> to vector<1x32xf32>
    %85 = arith.mulf %81, %84 : vector<1x32xf32>
    %86 = arith.addf %83, %85 : vector<1x32xf32>
    %87 = math.tanh %86 : vector<1x32xf32>
    %cst_13 = arith.constant 1.000000e+00 : f32
    %88 = vector.broadcast %cst_13 : f32 to vector<1x32xf32>
    %89 = arith.subf %88, %82 : vector<1x32xf32>
    %90 = arith.mulf %89, %87 : vector<1x32xf32>
    %91 = arith.mulf %82, %69 : vector<1x32xf32>
    %92 = arith.addf %90, %91 : vector<1x32xf32>
    %cst_14 = arith.constant dense<0.000000e+00> : vector<1x128xf32>
    %93 = tpu.matmul %92, %44, %cst_14 {dimension_numbers = #tpu.dot_dimension_numbers<[1], [0], [0], [1], [0, 0, 1, 1], [], []>} : vector<1x32xf32>, vector<32x128xf32>, vector<1x128xf32> -> vector<1x128xf32>
    %94 = arith.addf %93, %45 : vector<1x128xf32>
    %95 = vector.extract_strided_slice %43 {offsets = [2, 0], sizes = [1, 128], strides = [1, 1]} : vector<8x128xf32> to vector<1x128xf32>
    %96 = vector.extract_strided_slice %95 {offsets = [0, 0], sizes = [1, 64], strides = [1, 1]} : vector<1x128xf32> to vector<1x64xf32>
    %97 = vector.extract_strided_slice %94 {offsets = [0, 0], sizes = [1, 64], strides = [1, 1]} : vector<1x128xf32> to vector<1x64xf32>
    %98 = arith.addf %96, %97 : vector<1x64xf32>
    %99 = arith.negf %98 : vector<1x64xf32>
    %100 = math.exp %99 : vector<1x64xf32>
    %cst_15 = arith.constant 1.000000e+00 : f32
    %101 = vector.broadcast %cst_15 : f32 to vector<1x64xf32>
    %102 = arith.addf %101, %100 : vector<1x64xf32>
    %103 = arith.divf %101, %102 : vector<1x64xf32>
    %104 = vector.extract_strided_slice %103 {offsets = [0, 0], sizes = [1, 32], strides = [1, 1]} : vector<1x64xf32> to vector<1x32xf32>
    %105 = vector.extract_strided_slice %103 {offsets = [0, 32], sizes = [1, 32], strides = [1, 1]} : vector<1x64xf32> to vector<1x32xf32>
    %106 = vector.extract_strided_slice %95 {offsets = [0, 64], sizes = [1, 32], strides = [1, 1]} : vector<1x128xf32> to vector<1x32xf32>
    %107 = vector.extract_strided_slice %94 {offsets = [0, 64], sizes = [1, 32], strides = [1, 1]} : vector<1x128xf32> to vector<1x32xf32>
    %108 = arith.mulf %104, %107 : vector<1x32xf32>
    %109 = arith.addf %106, %108 : vector<1x32xf32>
    %110 = math.tanh %109 : vector<1x32xf32>
    %cst_16 = arith.constant 1.000000e+00 : f32
    %111 = vector.broadcast %cst_16 : f32 to vector<1x32xf32>
    %112 = arith.subf %111, %105 : vector<1x32xf32>
    %113 = arith.mulf %112, %110 : vector<1x32xf32>
    %114 = arith.mulf %105, %92 : vector<1x32xf32>
    %115 = arith.addf %113, %114 : vector<1x32xf32>
    %cst_17 = arith.constant dense<0.000000e+00> : vector<1x128xf32>
    %116 = tpu.matmul %115, %44, %cst_17 {dimension_numbers = #tpu.dot_dimension_numbers<[1], [0], [0], [1], [0, 0, 1, 1], [], []>} : vector<1x32xf32>, vector<32x128xf32>, vector<1x128xf32> -> vector<1x128xf32>
    %117 = arith.addf %116, %45 : vector<1x128xf32>
    %118 = vector.extract_strided_slice %43 {offsets = [3, 0], sizes = [1, 128], strides = [1, 1]} : vector<8x128xf32> to vector<1x128xf32>
    %119 = vector.extract_strided_slice %118 {offsets = [0, 0], sizes = [1, 64], strides = [1, 1]} : vector<1x128xf32> to vector<1x64xf32>
    %120 = vector.extract_strided_slice %117 {offsets = [0, 0], sizes = [1, 64], strides = [1, 1]} : vector<1x128xf32> to vector<1x64xf32>
    %121 = arith.addf %119, %120 : vector<1x64xf32>
    %122 = arith.negf %121 : vector<1x64xf32>
    %123 = math.exp %122 : vector<1x64xf32>
    %cst_18 = arith.constant 1.000000e+00 : f32
    %124 = vector.broadcast %cst_18 : f32 to vector<1x64xf32>
    %125 = arith.addf %124, %123 : vector<1x64xf32>
    %126 = arith.divf %124, %125 : vector<1x64xf32>
    %127 = vector.extract_strided_slice %126 {offsets = [0, 0], sizes = [1, 32], strides = [1, 1]} : vector<1x64xf32> to vector<1x32xf32>
    %128 = vector.extract_strided_slice %126 {offsets = [0, 32], sizes = [1, 32], strides = [1, 1]} : vector<1x64xf32> to vector<1x32xf32>
    %129 = vector.extract_strided_slice %118 {offsets = [0, 64], sizes = [1, 32], strides = [1, 1]} : vector<1x128xf32> to vector<1x32xf32>
    %130 = vector.extract_strided_slice %117 {offsets = [0, 64], sizes = [1, 32], strides = [1, 1]} : vector<1x128xf32> to vector<1x32xf32>
    %131 = arith.mulf %127, %130 : vector<1x32xf32>
    %132 = arith.addf %129, %131 : vector<1x32xf32>
    %133 = math.tanh %132 : vector<1x32xf32>
    %cst_19 = arith.constant 1.000000e+00 : f32
    %134 = vector.broadcast %cst_19 : f32 to vector<1x32xf32>
    %135 = arith.subf %134, %128 : vector<1x32xf32>
    %136 = arith.mulf %135, %133 : vector<1x32xf32>
    %137 = arith.mulf %128, %115 : vector<1x32xf32>
    %138 = arith.addf %136, %137 : vector<1x32xf32>
    %cst_20 = arith.constant dense<0.000000e+00> : vector<1x128xf32>
    %139 = tpu.matmul %138, %44, %cst_20 {dimension_numbers = #tpu.dot_dimension_numbers<[1], [0], [0], [1], [0, 0, 1, 1], [], []>} : vector<1x32xf32>, vector<32x128xf32>, vector<1x128xf32> -> vector<1x128xf32>
    %140 = arith.addf %139, %45 : vector<1x128xf32>
    %141 = vector.extract_strided_slice %43 {offsets = [4, 0], sizes = [1, 128], strides = [1, 1]} : vector<8x128xf32> to vector<1x128xf32>
    %142 = vector.extract_strided_slice %141 {offsets = [0, 0], sizes = [1, 64], strides = [1, 1]} : vector<1x128xf32> to vector<1x64xf32>
    %143 = vector.extract_strided_slice %140 {offsets = [0, 0], sizes = [1, 64], strides = [1, 1]} : vector<1x128xf32> to vector<1x64xf32>
    %144 = arith.addf %142, %143 : vector<1x64xf32>
    %145 = arith.negf %144 : vector<1x64xf32>
    %146 = math.exp %145 : vector<1x64xf32>
    %cst_21 = arith.constant 1.000000e+00 : f32
    %147 = vector.broadcast %cst_21 : f32 to vector<1x64xf32>
    %148 = arith.addf %147, %146 : vector<1x64xf32>
    %149 = arith.divf %147, %148 : vector<1x64xf32>
    %150 = vector.extract_strided_slice %149 {offsets = [0, 0], sizes = [1, 32], strides = [1, 1]} : vector<1x64xf32> to vector<1x32xf32>
    %151 = vector.extract_strided_slice %149 {offsets = [0, 32], sizes = [1, 32], strides = [1, 1]} : vector<1x64xf32> to vector<1x32xf32>
    %152 = vector.extract_strided_slice %141 {offsets = [0, 64], sizes = [1, 32], strides = [1, 1]} : vector<1x128xf32> to vector<1x32xf32>
    %153 = vector.extract_strided_slice %140 {offsets = [0, 64], sizes = [1, 32], strides = [1, 1]} : vector<1x128xf32> to vector<1x32xf32>
    %154 = arith.mulf %150, %153 : vector<1x32xf32>
    %155 = arith.addf %152, %154 : vector<1x32xf32>
    %156 = math.tanh %155 : vector<1x32xf32>
    %cst_22 = arith.constant 1.000000e+00 : f32
    %157 = vector.broadcast %cst_22 : f32 to vector<1x32xf32>
    %158 = arith.subf %157, %151 : vector<1x32xf32>
    %159 = arith.mulf %158, %156 : vector<1x32xf32>
    %160 = arith.mulf %151, %138 : vector<1x32xf32>
    %161 = arith.addf %159, %160 : vector<1x32xf32>
    %cst_23 = arith.constant dense<0.000000e+00> : vector<1x128xf32>
    %162 = tpu.matmul %161, %44, %cst_23 {dimension_numbers = #tpu.dot_dimension_numbers<[1], [0], [0], [1], [0, 0, 1, 1], [], []>} : vector<1x32xf32>, vector<32x128xf32>, vector<1x128xf32> -> vector<1x128xf32>
    %163 = arith.addf %162, %45 : vector<1x128xf32>
    %164 = vector.extract_strided_slice %43 {offsets = [5, 0], sizes = [1, 128], strides = [1, 1]} : vector<8x128xf32> to vector<1x128xf32>
    %165 = vector.extract_strided_slice %164 {offsets = [0, 0], sizes = [1, 64], strides = [1, 1]} : vector<1x128xf32> to vector<1x64xf32>
    %166 = vector.extract_strided_slice %163 {offsets = [0, 0], sizes = [1, 64], strides = [1, 1]} : vector<1x128xf32> to vector<1x64xf32>
    %167 = arith.addf %165, %166 : vector<1x64xf32>
    %168 = arith.negf %167 : vector<1x64xf32>
    %169 = math.exp %168 : vector<1x64xf32>
    %cst_24 = arith.constant 1.000000e+00 : f32
    %170 = vector.broadcast %cst_24 : f32 to vector<1x64xf32>
    %171 = arith.addf %170, %169 : vector<1x64xf32>
    %172 = arith.divf %170, %171 : vector<1x64xf32>
    %173 = vector.extract_strided_slice %172 {offsets = [0, 0], sizes = [1, 32], strides = [1, 1]} : vector<1x64xf32> to vector<1x32xf32>
    %174 = vector.extract_strided_slice %172 {offsets = [0, 32], sizes = [1, 32], strides = [1, 1]} : vector<1x64xf32> to vector<1x32xf32>
    %175 = vector.extract_strided_slice %164 {offsets = [0, 64], sizes = [1, 32], strides = [1, 1]} : vector<1x128xf32> to vector<1x32xf32>
    %176 = vector.extract_strided_slice %163 {offsets = [0, 64], sizes = [1, 32], strides = [1, 1]} : vector<1x128xf32> to vector<1x32xf32>
    %177 = arith.mulf %173, %176 : vector<1x32xf32>
    %178 = arith.addf %175, %177 : vector<1x32xf32>
    %179 = math.tanh %178 : vector<1x32xf32>
    %cst_25 = arith.constant 1.000000e+00 : f32
    %180 = vector.broadcast %cst_25 : f32 to vector<1x32xf32>
    %181 = arith.subf %180, %174 : vector<1x32xf32>
    %182 = arith.mulf %181, %179 : vector<1x32xf32>
    %183 = arith.mulf %174, %161 : vector<1x32xf32>
    %184 = arith.addf %182, %183 : vector<1x32xf32>
    %cst_26 = arith.constant dense<0.000000e+00> : vector<1x128xf32>
    %185 = tpu.matmul %184, %44, %cst_26 {dimension_numbers = #tpu.dot_dimension_numbers<[1], [0], [0], [1], [0, 0, 1, 1], [], []>} : vector<1x32xf32>, vector<32x128xf32>, vector<1x128xf32> -> vector<1x128xf32>
    %186 = arith.addf %185, %45 : vector<1x128xf32>
    %187 = vector.extract_strided_slice %43 {offsets = [6, 0], sizes = [1, 128], strides = [1, 1]} : vector<8x128xf32> to vector<1x128xf32>
    %188 = vector.extract_strided_slice %187 {offsets = [0, 0], sizes = [1, 64], strides = [1, 1]} : vector<1x128xf32> to vector<1x64xf32>
    %189 = vector.extract_strided_slice %186 {offsets = [0, 0], sizes = [1, 64], strides = [1, 1]} : vector<1x128xf32> to vector<1x64xf32>
    %190 = arith.addf %188, %189 : vector<1x64xf32>
    %191 = arith.negf %190 : vector<1x64xf32>
    %192 = math.exp %191 : vector<1x64xf32>
    %cst_27 = arith.constant 1.000000e+00 : f32
    %193 = vector.broadcast %cst_27 : f32 to vector<1x64xf32>
    %194 = arith.addf %193, %192 : vector<1x64xf32>
    %195 = arith.divf %193, %194 : vector<1x64xf32>
    %196 = vector.extract_strided_slice %195 {offsets = [0, 0], sizes = [1, 32], strides = [1, 1]} : vector<1x64xf32> to vector<1x32xf32>
    %197 = vector.extract_strided_slice %195 {offsets = [0, 32], sizes = [1, 32], strides = [1, 1]} : vector<1x64xf32> to vector<1x32xf32>
    %198 = vector.extract_strided_slice %187 {offsets = [0, 64], sizes = [1, 32], strides = [1, 1]} : vector<1x128xf32> to vector<1x32xf32>
    %199 = vector.extract_strided_slice %186 {offsets = [0, 64], sizes = [1, 32], strides = [1, 1]} : vector<1x128xf32> to vector<1x32xf32>
    %200 = arith.mulf %196, %199 : vector<1x32xf32>
    %201 = arith.addf %198, %200 : vector<1x32xf32>
    %202 = math.tanh %201 : vector<1x32xf32>
    %cst_28 = arith.constant 1.000000e+00 : f32
    %203 = vector.broadcast %cst_28 : f32 to vector<1x32xf32>
    %204 = arith.subf %203, %197 : vector<1x32xf32>
    %205 = arith.mulf %204, %202 : vector<1x32xf32>
    %206 = arith.mulf %197, %184 : vector<1x32xf32>
    %207 = arith.addf %205, %206 : vector<1x32xf32>
    %cst_29 = arith.constant dense<0.000000e+00> : vector<1x128xf32>
    %208 = tpu.matmul %207, %44, %cst_29 {dimension_numbers = #tpu.dot_dimension_numbers<[1], [0], [0], [1], [0, 0, 1, 1], [], []>} : vector<1x32xf32>, vector<32x128xf32>, vector<1x128xf32> -> vector<1x128xf32>
    %209 = arith.addf %208, %45 : vector<1x128xf32>
    %210 = vector.extract_strided_slice %43 {offsets = [7, 0], sizes = [1, 128], strides = [1, 1]} : vector<8x128xf32> to vector<1x128xf32>
    %211 = vector.extract_strided_slice %210 {offsets = [0, 0], sizes = [1, 64], strides = [1, 1]} : vector<1x128xf32> to vector<1x64xf32>
    %212 = vector.extract_strided_slice %209 {offsets = [0, 0], sizes = [1, 64], strides = [1, 1]} : vector<1x128xf32> to vector<1x64xf32>
    %213 = arith.addf %211, %212 : vector<1x64xf32>
    %214 = arith.negf %213 : vector<1x64xf32>
    %215 = math.exp %214 : vector<1x64xf32>
    %cst_30 = arith.constant 1.000000e+00 : f32
    %216 = vector.broadcast %cst_30 : f32 to vector<1x64xf32>
    %217 = arith.addf %216, %215 : vector<1x64xf32>
    %218 = arith.divf %216, %217 : vector<1x64xf32>
    %219 = vector.extract_strided_slice %218 {offsets = [0, 0], sizes = [1, 32], strides = [1, 1]} : vector<1x64xf32> to vector<1x32xf32>
    %220 = vector.extract_strided_slice %218 {offsets = [0, 32], sizes = [1, 32], strides = [1, 1]} : vector<1x64xf32> to vector<1x32xf32>
    %221 = vector.extract_strided_slice %210 {offsets = [0, 64], sizes = [1, 32], strides = [1, 1]} : vector<1x128xf32> to vector<1x32xf32>
    %222 = vector.extract_strided_slice %209 {offsets = [0, 64], sizes = [1, 32], strides = [1, 1]} : vector<1x128xf32> to vector<1x32xf32>
    %223 = arith.mulf %219, %222 : vector<1x32xf32>
    %224 = arith.addf %221, %223 : vector<1x32xf32>
    %225 = math.tanh %224 : vector<1x32xf32>
    %cst_31 = arith.constant 1.000000e+00 : f32
    %226 = vector.broadcast %cst_31 : f32 to vector<1x32xf32>
    %227 = arith.subf %226, %220 : vector<1x32xf32>
    %228 = arith.mulf %227, %225 : vector<1x32xf32>
    %229 = arith.mulf %220, %207 : vector<1x32xf32>
    %230 = arith.addf %228, %229 : vector<1x32xf32>
    %231 = tpu.concatenate %69, %92, %115, %138, %161, %184, %207, %230 in 0 : vector<1x32xf32>, vector<1x32xf32>, vector<1x32xf32>, vector<1x32xf32>, vector<1x32xf32>, vector<1x32xf32>, vector<1x32xf32>, vector<1x32xf32> -> vector<8x32xf32>
    %c0_32 = arith.constant 0 : index
    %c0_33 = arith.constant 0 : index
    %232 = vector.load %arg6[%c0_32, %c0_33] : memref<32x128xf32, #tpu.memory_space<vmem>>, vector<32x128xf32>
    %cst_34 = arith.constant dense<0.000000e+00> : vector<8x128xf32>
    %233 = tpu.matmul %231, %232, %cst_34 {dimension_numbers = #tpu.dot_dimension_numbers<[1], [0], [0], [1], [0, 0, 1, 1], [], []>} : vector<8x32xf32>, vector<32x128xf32>, vector<8x128xf32> -> vector<8x128xf32>
    %c0_35 = arith.constant 0 : index
    %c0_36 = arith.constant 0 : index
    %234 = vector.load %arg7[%c0_35, %c0_36] : memref<1x128xf32, #tpu.memory_space<vmem>>, vector<1x128xf32>
    %235 = vector.broadcast %234 : vector<1x128xf32> to vector<8x128xf32>
    %236 = arith.addf %233, %235 : vector<8x128xf32>
    %237 = tpu.iota {dimensions = array<i32: 1>} : vector<8x128xi32>
    %c48_i32 = arith.constant 48 : i32
    %238 = vector.broadcast %c48_i32 : i32 to vector<8x128xi32>
    %239 = arith.cmpi slt, %237, %238 : vector<8x128xi32>
    %cst_37 = arith.constant -1.000000e+30 : f32
    %240 = vector.broadcast %cst_37 : f32 to vector<8x128xf32>
    %241 = arith.select %239, %236, %240 : vector<8x128xi1>, vector<8x128xf32>
    %cst_38 = arith.constant dense<0xFF800000> : vector<8xf32>
    %242 = vector.multi_reduction <maximumf>, %241, %cst_38 [1] : vector<8x128xf32> to vector<8xf32>
    %243 = vector.shape_cast %242 : vector<8xf32> to vector<8x1xf32>
    %244 = vector.broadcast %243 : vector<8x1xf32> to vector<8x128xf32>
    %245 = arith.subf %241, %244 : vector<8x128xf32>
    %246 = math.exp %245 : vector<8x128xf32>
    %cst_39 = arith.constant dense<0.000000e+00> : vector<8xf32>
    %247 = vector.multi_reduction <add>, %246, %cst_39 [1] : vector<8x128xf32> to vector<8xf32>
    %248 = vector.shape_cast %247 : vector<8xf32> to vector<8x1xf32>
    %249 = math.log %248 : vector<8x1xf32>
    %250 = arith.addf %243, %249 : vector<8x1xf32>
    %251 = vector.broadcast %250 : vector<8x1xf32> to vector<8x128xf32>
    %252 = arith.subf %241, %251 : vector<8x128xf32>
    %c0_40 = arith.constant 0 : index
    %c0_41 = arith.constant 0 : index
    %253 = vector.load %arg8[%c0_40, %c0_41] : memref<8x128xf32, #tpu.memory_space<vmem>>, vector<8x128xf32>
    tpu.vector_store %arg8[%c0_40, %c0_41], %252 {strides = array<i32>} : memref<8x128xf32, #tpu.memory_space<vmem>>, vector<8x128xf32>,
    %c0_42 = arith.constant 0 : index
    %c0_43 = arith.constant 0 : index
    %254 = vector.load %arg9[%c0_42, %c0_43] : memref<1x32xf32, #tpu.memory_space<vmem>>, vector<1x32xf32>
    tpu.vector_store %arg9[%c0_42, %c0_43], %230 {strides = array<i32>} : memref<1x32xf32, #tpu.memory_space<vmem>>, vector<1x32xf32>,
    return
  }
  func.func @transform_0(%arg0: i32, %arg1: memref<8xi32, #tpu.memory_space<smem>>) -> (i32, i32) {
    %c0_i32 = arith.constant 0 : i32
    %c0_i32_0 = arith.constant 0 : i32
    %c0_i32_1 = arith.constant 0 : i32
    return %c0_i32, %c0_i32_0 : i32, i32
  }
  func.func @transform_1(%arg0: i32, %arg1: memref<8xi32, #tpu.memory_space<smem>>) -> (i32, i32) {
    %c0_i32 = arith.constant 0 : i32
    %c0_i32_0 = arith.constant 0 : i32
    %c0_i32_1 = arith.constant 0 : i32
    return %c0_i32, %c0_i32_0 : i32, i32
  }
  func.func @transform_2(%arg0: i32, %arg1: memref<8xi32, #tpu.memory_space<smem>>) -> (i32, i32) {
    %c0_i32 = arith.constant 0 : i32
    %c0_i32_0 = arith.constant 0 : i32
    %c0_i32_1 = arith.constant 0 : i32
    return %c0_i32, %c0_i32_0 : i32, i32
  }
  func.func @transform_3(%arg0: i32, %arg1: memref<8xi32, #tpu.memory_space<smem>>) -> (i32, i32) {
    %c0_i32 = arith.constant 0 : i32
    %c0_i32_0 = arith.constant 0 : i32
    %c0_i32_1 = arith.constant 0 : i32
    return %c0_i32, %c0_i32_0 : i32, i32
  }
  func.func @transform_4(%arg0: i32, %arg1: memref<8xi32, #tpu.memory_space<smem>>) -> (i32, i32) {
    %c0_i32 = arith.constant 0 : i32
    %c0_i32_0 = arith.constant 0 : i32
    %c0_i32_1 = arith.constant 0 : i32
    return %c0_i32, %c0_i32_0 : i32, i32
  }
  func.func @transform_5(%arg0: i32, %arg1: memref<8xi32, #tpu.memory_space<smem>>) -> (i32, i32) {
    %c0_i32 = arith.constant 0 : i32
    %c0_i32_0 = arith.constant 0 : i32
    %c0_i32_1 = arith.constant 0 : i32
    return %c0_i32, %c0_i32_0 : i32, i32
  }
  func.func @transform_6(%arg0: i32, %arg1: memref<8xi32, #tpu.memory_space<smem>>) -> (i32, i32) {
    %c0_i32 = arith.constant 0 : i32
    %c0_i32_0 = arith.constant 0 : i32
    %c0_i32_1 = arith.constant 0 : i32
    return %c0_i32, %c0_i32_0 : i32, i32
  }
  func.func @transform_7(%arg0: i32, %arg1: memref<8xi32, #tpu.memory_space<smem>>) -> (i32, i32) {
    %c0_i32 = arith.constant 0 : i32
    %c0_i32_0 = arith.constant 0 : i32
    %c0_i32_1 = arith.constant 0 : i32
    return %c0_i32, %c0_i32_0 : i32, i32
  }
}

</mosaic_0001>

<bundles_post_ra>
// kernel: tpu_custom_call.1
= control target key start
LH: loop header
LB: loop body
LE: loop exit
PB: predicated region body
PF: predicated region fallthrough
CT: control target
= control target key end

     0   :  { %s2010_s0 = inlined_call_operand.hbm [shape: s32[8], index: 0, kind: input, shape index: {}]   ;;  %s2011_s1 = inlined_call_operand.hbm [shape: f32[48,128], index: 1, kind: input, shape index: {}]   ;;  %s2012_s2 = inlined_call_operand.vmem [shape: f32[1,32], index: 2, kind: input, shape index: {}]   ;;  %s2013_s3 = inlined_call_operand.hbm [shape: f32[32,128], index: 3, kind: input, shape index: {}]   ;;  %s2014_s4 = inlined_call_operand.vmem [shape: f32[1,128], index: 4, kind: input, shape index: {}]   ;;  %s2015_s5 = inlined_call_operand.hbm [shape: f32[32,128], index: 5, kind: input, shape index: {}]   ;;  %s2016_s6 = inlined_call_operand.vmem [shape: f32[1,128], index: 6, kind: input, shape index: {}]   ;;  %s2017_s7 = inlined_call_operand.hbm [shape: f32[8,128], index: 7, kind: output, shape index: {0}]   ;;  %s2018_s8 = inlined_call_operand.hbm [shape: f32[1,32], index: 8, kind: output, shape index: {1}]  }
   0x1   :  { %s1535_s29 = scalar_lea.hbm %s2010_s0, 16 }
   0x2   :  { %p1536_p0 = scmp.ne.s32.totalorder %s2010_s0, %s1535_s29  ;;  %p1539_p1 = scmp.lt.u32.totalorder %s1535_s29, %s2010_s0 }
   0x4   :  { %p1541_p2 = pnand %p1539_p1, %p1536_p0 }
   0x6   :  { %1544 = shalt.err (!%p1541_p2)  }
   0x7   :  { %s1665_s12 = smov [#allocation3]  }
   0x8   :  { %15 = dma.hbm_to_smem %s2010_s0, 16, %s1665_s12, [#allocation2] }
   0x9   :  { %1655 = dma.done.wait [#allocation2], 16 }
   0xa   :  { %1656 = vsyncadd [#allocation2], 4294967280 }
   0xb   :  { %17 = sfence }
   0xc   :  { %18 = vsyncpa [#allocation5], 0 }
   0xd   :  { %19 = vsyncpa [#allocation8], 0 }
   0xe   :  { %20 = vsyncpa [#allocation6], 0 }
   0xf   :  { %21 = vsyncpa [#allocation12], 0  ;;  %s1666_s15 = smov [#allocation7]   ;;  %s1667_s17 = smov [#allocation4]  }
  0x10   :  { %s41_s16 = sshll.u32 %s1666_s15, 4  ;;  %s27_s18 = sshll.u32 %s1667_s17, 4  ;;  %s42_s16 = int_to_ptr.vmem [resolvable:$true] %s41_s16  ;;  %s1736_s18 = int_to_ptr.vmem [resolvable:$true] %s27_s18 }
  0x11   :  { %s1545_s21 = scalar_lea.hbm %s2013_s3, 512 }
  0x12   :  { %p1546_p3 = scmp.ne.s32.totalorder %s2013_s3, %s1545_s21  ;;  %p1549_p4 = scmp.lt.u32.totalorder %s1545_s21, %s2013_s3 }
  0x14   :  { %p1551_p5 = pnand %p1549_p4, %p1546_p3 }
  0x16   :  { %1554 = shalt.err (!%p1551_p5)
}
  0x17   :  { %s1555_s25 = scalar_lea.vmem %s42_s16, 512  ;;  %p1560_p7 = scmp.lt.s32.totalorder %s42_s16, %s42_s16 }
  0x18   :  { %p1556_p6 = scmp.ne.s32.totalorder %s42_s16, %s1555_s25  ;;  %p1561_p8 = scmp.lt.s32.totalorder %s1555_s25, %s1555_s25 }
  0x1a   :  { %p1562_p9 = por %p1561_p8, %p1560_p7 }
  0x1c   :  { %p1563_p10 = pnand %p1562_p9, %p1556_p6 }
  0x1e   :  { %1566 = shalt.err (!%p1563_p10)
}
  0x1f   :  { %s1668_s26 = smov 128   ;;  %s1669_s27 = smov 8  }
  0x20   :  { %47 = dma.hbm_to_vmem [thread:$0]  %s2013_s3, 512, %s42_s16, [#allocation8], %s1668_s26, %s1668_s26, %s1669_s27  }
  0x21   :  { %s1567_s10 = scalar_lea.hbm %s2011_s1, 768 }
  0x22   :  { %p1568_p11 = scmp.ne.s32.totalorder %s2011_s1, %s1567_s10  ;;  %p1571_p12 = scmp.lt.u32.totalorder %s1567_s10, %s2011_s1 }
  0x24   :  { %p1573_p13 = pnand %p1571_p12, %p1568_p11 }
  0x26   :  { %1576 = shalt.err (!%p1573_p13)
}
  0x27   :  { %s1577_s15 = scalar_lea.vmem %s1736_s18, 768  ;;  %p1582_p1 = scmp.lt.s32.totalorder %s1736_s18, %s1736_s18 }
  0x28   :  { %p1578_p0 = scmp.ne.s32.totalorder %s1736_s18, %s1577_s15  ;;  %p1583_p2 = scmp.lt.s32.totalorder %s1577_s15, %s1577_s15 }
  0x2a   :  { %p1584_p3 = por %p1583_p2, %p1582_p1 }
  0x2c   :  { %p1585_p4 = pnand %p1584_p3, %p1578_p0 }
  0x2e   :  { %1588 = shalt.err (!%p1585_p4)
}
  0x2f   :  { %33 = dma.hbm_to_vmem [thread:$0]  %s2011_s1, 768, %s1736_s18, [#allocation5], %s1668_s26, %s1668_s26, %s1669_s27  }
  0x30   :  { %s1670_s17 = smov [#allocation9]   ;;  %s1589_s22 = scalar_lea.hbm %s2015_s5, 512 }
  0x31   :  { %s55_s19 = sshll.u32 %s1670_s17, 4  ;;  %p1590_p5 = scmp.ne.s32.totalorder %s2015_s5, %s1589_s22  ;;  %s56_s19 = int_to_ptr.vmem [resolvable:$true] %s55_s19 }
  0x32   :  { %p1593_p6 = scmp.lt.u32.totalorder %s1589_s22, %s2015_s5 }
  0x34   :  { %p1595_p7 = pnand %p1593_p6, %p1590_p5 }
  0x36   :  { %1598 = shalt.err (!%p1595_p7)
}
  0x37   :  { %s1599_s28 = scalar_lea.vmem %s56_s19, 512  ;;  %p1604_p9 = scmp.lt.s32.totalorder %s56_s19, %s56_s19 }
  0x38   :  { %p1600_p8 = scmp.ne.s32.totalorder %s56_s19, %s1599_s28  ;;  %p1605_p10 = scmp.lt.s32.totalorder %s1599_s28, %s1599_s28 }
  0x3a   :  { %p1606_p11 = por %p1605_p10, %p1604_p9 }
  0x3c   :  { %p1607_p12 = pnand %p1606_p11, %p1600_p8 }
  0x3e   :  { %1610 = shalt.err (!%p1607_p12)
}
  0x3f   :  { %61 = dma.hbm_to_vmem [thread:$0]  %s2015_s5, 512, %s56_s19, [#allocation8], %s1668_s26, %s1668_s26, %s1669_s27  }
  0x40   :  { %1657 = dma.done.wait [#allocation5], 768  }
  0x41   :  { %1658 = vsyncadd [#allocation5], 4294966528 }
  0x42   :  { %1659 = dma.done.wait [#allocation8], 1024  }
  0x43   :  { %1660 = vsyncadd [#allocation8], 4294966272  ;;  %v1671_v0 = vmov 0.0|0.0   ;;  %v73_v1 = vlaneseq  ;;  %s75_s29 = sld [smem:[#allocation3]]  ;;  %s1207_s30 = sld [smem:[#allocation3 + $0x1]]  ;;  %vm1672_vm0 = vmmov 0  }
  0x44   :  { %1406 = vmatprep.subr.bf16.mxu0 %v1671_v0  ;;  %1415 = vmatprep.subr.bf16.mxu1 %v1671_v0  ;;  %v1673_v2 = vmov 0.0   ;;  %s1794_s5 = sld [smem:[#allocation3 + $0x2]]  ;;  %s1796_s26 = sld [smem:[#allocation3 + $0x3]]  ;;  %vm115_vm1 = vcmask 1040384   ;;  %vm117_vm2 = vcmask 1041408   ;;  %v129_v4 = vld [vmem:[#allocation4] sm:$0xff] }
  0x45   :  { %1315 = vmatprep.mubr.msk.f32.mxu1 %vm1672_vm0, %v1673_v2  ;;  %1304 = vmatprep.mubr.msk.f32.mxu0 %vm1672_vm0, %v1673_v2  ;;  %s1798_s27 = sld [smem:[#allocation3 + $0x4]]  ;;  %v1801_v3 = vand.u32 127, %v73_v1  ;;  %s1803_s9 = sld [smem:[#allocation3 + $0x5]]  ;;  %v130_v5 = vld [vmem:[#allocation4 + $0x8] sm:$0xff]  ;;  %v209_v6 = vld [vmem:[#allocation7] sm:$0xff]  ;;  %vm119_vm3 = vcmask 1042432  }
  0x46   :  { %s1805_s10 = sld [smem:[#allocation3 + $0x6]]  ;;  %s1807_s11 = sld [smem:[#allocation3 + $0x7]]  ;;  %vm121_vm4 = vcmask 1043456   ;;  %v1407_v9 = vpack.c.bf16 %v130_v5, %v129_v4  ;;  %v210_v10 = vld [vmem:[#allocation7 + $0x8] sm:$0xff]  ;;  %v131_v11 = vld [vmem:[#allocation4 + $0x10] sm:$0xff]  ;;  %v211_v16 = vld [vmem:[#allocation7 + $0x10] sm:$0xff] }
  0x47   :  { %v132_v12 = vld [vmem:[#allocation4 + $0x18] sm:$0xff]  ;;  %v1812_v14 = vpack.c.bf16 %v210_v10, %v209_v6  ;;  %v212_v17 = vld [vmem:[#allocation7 + $0x18] sm:$0xff]  ;;  %vm123_vm7 = vcmask 1044480   ;;  %v133_v23 = vld [vmem:[#allocation4 + $0x20] sm:$0xff]  ;;  %vm215_vm14 = vcmask 261120   ;;  %vm125_vm15 = vcmask 1045504  }
  0x48   :  { %v1410_v15 = vpack.c.bf16 %v132_v12, %v131_v11  ;;  %1408 = vmatpush3.bf16.msra.mxu0 %v1407_v9  ;;  %v1821_v22 = vpack.c.bf16 %v212_v17, %v211_v16  ;;  %v134_v24 = vld [vmem:[#allocation4 + $0x28] sm:$0xff]  ;;  %v214_v35 = vld [vmem:[%s2012_s2] sm:$0x1]  ;;  %s1674_s15 = smov 64   ;;  %v314_v58 = vshrl.u32 %v73_v1, 7  ;;  %s1676_s3 = smov 32  }
  0x49   :  { %v76_v7 = vstv %s75_s29  ;;  %v81_v8 = vstv %s1207_s30  ;;  %1417 = vmatpush3.bf16.msra.mxu1 %v1812_v14  ;;  %1409 = vmatprep.subr.bf16.mxu0 %v1671_v0  ;;  %v1413_v32 = vpack.c.bf16 %v134_v24, %v133_v23  ;;  %v1868_v43 = vld [vmem:[%s2014_s4] sm:$0x1]  ;;  %s1675_s4 = smov 96   ;;  %s1677_s19 = smov [#allocation11]  }
  0x4a   :  { %vm77_vm5 = vcmp.eq.s32.totalorder %v1801_v3, %v76_v7  ;;  %vm82_vm6 = vcmp.eq.s32.totalorder %v1801_v3, %v81_v8  ;;  %v86_v13 = vstv %s1794_s5  ;;  %v91_v20 = vstv %s1796_s26  ;;  %1418 = vmatprep.subr.bf16.mxu1 %v1671_v0  ;;  %s1192_s20 = sshll.u32 %s1677_s19, 4  ;;  %s1193_s20 = int_to_ptr.vmem [resolvable:$true] %s1192_s20 }
  0x4b   :  { %v1206_v18 = vsel %vm77_vm5, 1.0, %v1673_v2  ;;  %v1208_v19 = vsel %vm82_vm6, 1.0, %v1673_v2  ;;  %vm87_vm8 = vcmp.eq.s32.totalorder %v1801_v3, %v86_v13  ;;  %v96_v21 = vstv %s1798_s27  ;;  %s1615_s21 = scalar_lea.vmem %s1193_s20, 32  ;;  %p1616_p0 = scmp.lt.s32.totalorder %s1193_s20, %s1193_s20 }
  0x4c   :  { %v1210_v25 = vsel %vm87_vm8, 1.0, %v1673_v2  ;;  %vm92_vm9 = vcmp.eq.s32.totalorder %v1801_v3, %v91_v20  ;;  %vm97_vm10 = vcmp.eq.s32.totalorder %v1801_v3, %v96_v21  ;;  %v101_v28 = vstv %s1803_s9  ;;  %1411 = vmatpush3.bf16.msra.mxu0 %v1410_v15 }
  0x4d   :  { %v1212_v26 = vsel %vm92_vm9, 1.0, %v1673_v2  ;;  %v1214_v27 = vsel %vm97_vm10, 1.0, %v1673_v2  ;;  %v106_v29 = vstv %s1805_s10  ;;  %vm102_vm11 = vcmp.eq.s32.totalorder %v1801_v3, %v101_v28  ;;  %1420 = vmatpush3.bf16.msra.mxu1 %v1821_v22  ;;  %1412 = vmatprep.subr.bf16.mxu0 %v1671_v0 }
  0x4e   :  { %vm107_vm12 = vcmp.eq.s32.totalorder %v1801_v3, %v106_v29  ;;  %v111_v30 = vstv %s1807_s11  ;;  %v116_v31 = vsel %vm115_vm1, %v1206_v18, %v1208_v19  ;;  %v1216_v33 = vsel %vm102_vm11, 1.0, %v1673_v2  ;;  %1421 = vmatprep.subr.bf16.mxu1 %v1671_v0 }
  0x4f   :  { %vm112_vm13 = vcmp.eq.s32.totalorder %v1801_v3, %v111_v30  ;;  %v118_v34 = vsel %vm117_vm2, %v116_v31, %v1210_v25  ;;  %v1218_v36 = vsel %vm107_vm12, 1.0, %v1673_v2  ;;  %vm127_vm5 = vcmask 1046528  }
  0x50   :  { %v120_v37 = vsel %vm119_vm3, %v118_v34, %v1212_v26  ;;  %v1220_v38 = vsel %vm112_vm13, 1.0, %v1673_v2  ;;  %1316 = vmatmul.mubr.msk.f32.vlgmr.msra.gmra.mrb[0].mxu1 %vm215_vm14, %v214_v35  ;;  %1414 = vmatpush3.bf16.msra.mxu0 %v1413_v32  ;;  %vm135_vm6 = vcmask 392192   ;;  %v315_v59 = vsub.s32 0, %v314_v58 }
  0x51   :  { %v122_v39 = vsel %vm121_vm4, %v120_v37, %v1214_v27  ;;  %1423 = vmatpush3.bf16.msra.mxu1 %v1812_v14  ;;  %1326 = vmatprep.mubr.msk.f32.mxu1 %vm1672_vm0, %v1673_v2 }
  0x52   :  { %v124_v40 = vsel %vm123_vm7, %v122_v39, %v1216_v33  ;;  %1424 = vmatprep.subr.bf16.mxu1 %v1671_v0  ;;  %1427 = vmatprep.subr.bf16.mxu0 %v1671_v0  ;;  %v316_v61 = vrot.slane %v214_v35, %v315_v59 }
  0x53   :  { %v126_v41 = vsel %vm125_vm15, %v124_v40, %v1218_v36 }
  0x54   :  { %v128_v42 = vsel %vm127_vm5, %v126_v41, %v1220_v38 }
  0x55   :  { %1305 = vmatmul.mubr.msk.f32.vlgmr.msra.gmra.mrb[0].mxu0 %vm135_vm6, %v128_v42  ;;  %1426 = vmatpush3.bf16.msra.mxu1 %v1821_v22 }
  0x56   :  { %1429 = vmatpush3.bf16.msra.mxu0 %v1812_v14  ;;  %1337 = vmatprep.mubr.msk.f32.mxu0 %vm1672_vm0, %v1673_v2 }
  0x57   :  { %1430 = vmatprep.subr.bf16.mxu0 %v1671_v0  ;;  %1433 = vmatprep.subr.bf16.mxu1 %v1671_v0 }
  0x5a   :  { %1432 = vmatpush3.bf16.msra.mxu0 %v1821_v22 }
  0x5b   :  { %1439 = vmatprep.subr.bf16.mxu0 %v1671_v0 }
 0x123   :  { %v285_v44 = vpop.f32.mrb[0].mxu1 }
 0x124   :  { %v286_v45 = vadd.f32 %v285_v44, %v1868_v43  ;;  %v1317_v46 = vpop.f32.mrb[1].mxu1 }
 0x126   :  { %297 = vrot.lane.b32.xlu0 %v286_v45, %s1674_s15 }
 0x128   :  { %v1872_v47 = vpop.f32.mrb[0].mxu0 }
 0x129   :  { %v1306_v48 = vpop.f32.mrb[1].mxu0  ;;  %v289_v49 = vadd.f32 %v286_v45, %v1872_v47 }
 0x12b   :  { %v1223_v50 = vmul.f32 -1.442695, %v289_v49 }
 0x12d   :  { %1483 = vpow2.f32 %v1223_v50 }
 0x137   :  { %v1484_v51 = vpop.eup %1483 }
 0x138   :  { %v293_v52 = vadd.f32 1.0, %v1484_v51 }
 0x13a   :  { %1485 = vrcp.f32 %v293_v52 }
 0x144   :  { %v1486_v53 = vpop.eup %1485 }
 0x145   :  { %v307_v63 = vsub.f32 1.0, %v1486_v53 }
 0x198   :  { %v298_v54 = vpop.permute.xlu0 %297 }
 0x199   :  { %v300_v55 = vmul.f32 %v1486_v53, %v298_v54 }
 0x19b   :  { %302 = vrot.lane.b32.xlu0 %v300_v55, %s1674_s15 }
 0x20d   :  { %v303_v56 = vpop.permute.xlu0 %302 }
 0x20e   :  { %v305_v57 = vadd.f32 %v303_v56, %v1872_v47 }
 0x210   :  { %1487 = vtanh.f32 %v305_v57 }
 0x21a   :  { %v1488_v60 = vpop.eup %1487 }
 0x21b   :  { %309 = vrot.lane.b32.xlu1 %v1488_v60, %s1675_s4 }
 0x21f   :  { %317 = vrot.lane.b32.xlu1 %v316_v61, %s1676_s3 }
 0x28d   :  { %v310_v62 = vpop.permute.xlu1 %309 }
 0x28e   :  { %v312_v5 = vmul.f32 %v310_v62, %v307_v63 }
 0x291   :  { %v318_v4 = vpop.permute.xlu1 %317 }
 0x292   :  { %v320_v6 = vmul.f32 %v1486_v53, %v318_v4 }
 0x294   :  { %v1879_v7 = vadd.f32 %v320_v6, %v312_v5 }
 0x296   :  { %323 = vrot.lane.b32.xlu0 %v1879_v7, %s1675_s4  ;;  %v423_v25 = vrot.slane %v1879_v7, 7 }
 0x308   :  { %v324_v8 = vpop.permute.xlu0 %323 }
 0x309   :  { %1327 = vmatmul.mubr.msk.f32.vlgmr.msra.gmra.mrb[2].mxu1 %vm215_vm14, %v324_v8 }
 0x30a   :  { %1435 = vmatpush3.bf16.msra.mxu1 %v1812_v14  ;;  %1348 = vmatprep.mubr.msk.f32.mxu1 %vm1672_vm0, %v1673_v2 }
 0x30b   :  { %1436 = vmatprep.subr.bf16.mxu1 %v1671_v0 }
 0x30e   :  { %1438 = vmatpush3.bf16.msra.mxu1 %v1821_v22 }
 0x30f   :  { %1445 = vmatprep.subr.bf16.mxu1 %v1671_v0 }
 0x3dc   :  { %v393_v1 = vpop.f32.mrb[2].mxu1 }
 0x3dd   :  { %v394_v9 = vadd.f32 %v393_v1, %v1868_v43  ;;  %v1328_v10 = vpop.f32.mrb[3].mxu1 }
 0x3df   :  { %v398_v11 = vrot.slane %v394_v9, 7 }
 0x3e1   :  { %v400_v12 = vadd.f32 %v398_v11, %v1872_v47  ;;  %407 = vrot.lane.b32.xlu1 %v398_v11, %s1674_s15 }
 0x3e3   :  { %v1225_v13 = vmul.f32 -1.442695, %v400_v12 }
 0x3e5   :  { %1489 = vpow2.f32 %v1225_v13 }
 0x3ef   :  { %v1490_v15 = vpop.eup %1489 }
 0x3f0   :  { %v404_v16 = vadd.f32 1.0, %v1490_v15 }
 0x3f2   :  { %1491 = vrcp.f32 %v404_v16 }
 0x3fc   :  { %v1492_v17 = vpop.eup %1491 }
 0x3fd   :  { %v417_v24 = vsub.f32 1.0, %v1492_v17  ;;  %v425_v28 = vmul.f32 %v1492_v17, %v423_v25 }
 0x453   :  { %v408_v18 = vpop.permute.xlu1 %407 }
 0x454   :  { %v410_v19 = vmul.f32 %v1492_v17, %v408_v18 }
 0x456   :  { %412 = vrot.lane.b32.xlu0 %v410_v19, %s1674_s15 }
 0x4c8   :  { %v413_v20 = vpop.permute.xlu0 %412 }
 0x4c9   :  { %v415_v21 = vadd.f32 %v413_v20, %v1872_v47 }
 0x4cb   :  { %1493 = vtanh.f32 %v415_v21 }
 0x4d5   :  { %v1494_v23 = vpop.eup %1493 }
 0x4d6   :  { %419 = vrot.lane.b32.xlu1 %v1494_v23, %s1675_s4 }
 0x548   :  { %v420_v26 = vpop.permute.xlu1 %419 }
 0x549   :  { %v422_v27 = vmul.f32 %v420_v26, %v417_v24 }
 0x54b   :  { %v426_v29 = vadd.f32 %v425_v28, %v422_v27 }
 0x54d   :  { %v428_v30 = vrot.slane %v426_v29, 1  ;;  %v529_v49 = vrot.slane %v426_v29, 7  ;;  %v1063_v54 = vsel %vm115_vm1, %v1879_v7, %v426_v29  ;;  %vm1174_vm1 = vcmask 261127  }
 0x54f   :  { %429 = vrot.lane.b32.xlu0 %v428_v30, %s1675_s4 }
 0x5c1   :  { %v430_v31 = vpop.permute.xlu0 %429 }
 0x5c2   :  { %1338 = vmatmul.mubr.msk.f32.vlgmr.msra.gmra.mrb[2].mxu0 %vm215_vm14, %v430_v31 }
 0x5c3   :  { %1441 = vmatpush3.bf16.msra.mxu0 %v1812_v14  ;;  %1359 = vmatprep.mubr.msk.f32.mxu0 %vm1672_vm0, %v1673_v2 }
 0x5c4   :  { %1442 = vmatprep.subr.bf16.mxu0 %v1671_v0 }
 0x5c7   :  { %1444 = vmatpush3.bf16.msra.mxu0 %v1821_v22 }
 0x5c8   :  { %1451 = vmatprep.subr.bf16.mxu0 %v1671_v0 }
 0x695   :  { %v499_v32 = vpop.f32.mrb[2].mxu0 }
 0x696   :  { %v500_v33 = vadd.f32 %v499_v32, %v1868_v43  ;;  %v1339_v34 = vpop.f32.mrb[3].mxu0 }
 0x698   :  { %v504_v35 = vrot.slane %v500_v33, 6 }
 0x69a   :  { %v506_v36 = vadd.f32 %v504_v35, %v1872_v47  ;;  %513 = vrot.lane.b32.xlu1 %v504_v35, %s1674_s15 }
 0x69c   :  { %v1227_v37 = vmul.f32 -1.442695, %v506_v36 }
 0x69e   :  { %1495 = vpow2.f32 %v1227_v37 }
 0x6a8   :  { %v1496_v38 = vpop.eup %1495 }
 0x6a9   :  { %v510_v39 = vadd.f32 1.0, %v1496_v38 }
 0x6ab   :  { %1497 = vrcp.f32 %v510_v39 }
 0x6b5   :  { %v1498_v40 = vpop.eup %1497 }
 0x6b6   :  { %v523_v48 = vsub.f32 1.0, %v1498_v40  ;;  %v531_v51 = vmul.f32 %v1498_v40, %v529_v49 }
 0x70c   :  { %v514_v41 = vpop.permute.xlu1 %513 }
 0x70d   :  { %v516_v42 = vmul.f32 %v1498_v40, %v514_v41 }
 0x70f   :  { %518 = vrot.lane.b32.xlu0 %v516_v42, %s1674_s15 }
 0x781   :  { %v519_v44 = vpop.permute.xlu0 %518 }
 0x782   :  { %v521_v45 = vadd.f32 %v519_v44, %v1872_v47 }
 0x784   :  { %1499 = vtanh.f32 %v521_v45 }
 0x78e   :  { %v1500_v46 = vpop.eup %1499 }
 0x78f   :  { %525 = vrot.lane.b32.xlu1 %v1500_v46, %s1675_s4 }
 0x801   :  { %v526_v50 = vpop.permute.xlu1 %525 }
 0x802   :  { %v528_v52 = vmul.f32 %v526_v50, %v523_v48 }
 0x804   :  { %v532_v53 = vadd.f32 %v531_v51, %v528_v52 }
 0x806   :  { %v1064_v55 = vsel %vm117_vm2, %v1063_v54, %v532_v53  ;;  %v534_v56 = vrot.slane %v532_v53, 2  ;;  %v635_v12 = vrot.slane %v532_v53, 7 }
 0x808   :  { %535 = vrot.lane.b32.xlu0 %v534_v56, %s1675_s4 }
 0x87a   :  { %v536_v57 = vpop.permute.xlu0 %535 }
 0x87b   :  { %1349 = vmatmul.mubr.msk.f32.vlgmr.msra.gmra.mrb[4].mxu1 %vm215_vm14, %v536_v57 }
 0x87c   :  { %1447 = vmatpush3.bf16.msra.mxu1 %v1812_v14  ;;  %1370 = vmatprep.mubr.msk.f32.mxu1 %vm1672_vm0, %v1673_v2 }
 0x87d   :  { %1448 = vmatprep.subr.bf16.mxu1 %v1671_v0 }
 0x880   :  { %1450 = vmatpush3.bf16.msra.mxu1 %v1821_v22 }
 0x881   :  { %1457 = vmatprep.subr.bf16.mxu1 %v1671_v0 }
 0x94e   :  { %v605_v58 = vpop.f32.mrb[4].mxu1 }
 0x94f   :  { %v606_v59 = vadd.f32 %v605_v58, %v1868_v43  ;;  %v1350_v60 = vpop.f32.mrb[5].mxu1 }
 0x951   :  { %v610_v61 = vrot.slane %v606_v59, 5 }
 0x953   :  { %v612_v62 = vadd.f32 %v610_v61, %v1872_v47  ;;  %619 = vrot.lane.b32.xlu1 %v610_v61, %s1674_s15 }
 0x955   :  { %v1229_v63 = vmul.f32 -1.442695, %v612_v62 }
 0x957   :  { %1501 = vpow2.f32 %v1229_v63 }
 0x961   :  { %v1502_v4 = vpop.eup %1501 }
 0x962   :  { %v616_v5 = vadd.f32 1.0, %v1502_v4 }
 0x964   :  { %1503 = vrcp.f32 %v616_v5 }
 0x96e   :  { %v1504_v6 = vpop.eup %1503 }
 0x96f   :  { %v629_v11 = vsub.f32 1.0, %v1504_v6  ;;  %v637_v15 = vmul.f32 %v1504_v6, %v635_v12 }
 0x9c5   :  { %v620_v7 = vpop.permute.xlu1 %619 }
 0x9c6   :  { %v622_v8 = vmul.f32 %v1504_v6, %v620_v7 }
 0x9c8   :  { %624 = vrot.lane.b32.xlu0 %v622_v8, %s1674_s15 }
 0xa3a   :  { %v625_v1 = vpop.permute.xlu0 %624 }
 0xa3b   :  { %v627_v9 = vadd.f32 %v625_v1, %v1872_v47 }
 0xa3d   :  { %1505 = vtanh.f32 %v627_v9 }
 0xa47   :  { %v1506_v10 = vpop.eup %1505 }
 0xa48   :  { %631 = vrot.lane.b32.xlu1 %v1506_v10, %s1675_s4 }
 0xaba   :  { %v632_v13 = vpop.permute.xlu1 %631 }
 0xabb   :  { %v634_v16 = vmul.f32 %v632_v13, %v629_v11 }
 0xabd   :  { %v638_v17 = vadd.f32 %v637_v15, %v634_v16 }
 0xabf   :  { %v1065_v18 = vsel %vm119_vm3, %v1064_v55, %v638_v17  ;;  %v640_v19 = vrot.slane %v638_v17, 3  ;;  %v741_v37 = vrot.slane %v638_v17, 7 }
 0xac1   :  { %641 = vrot.lane.b32.xlu0 %v640_v19, %s1675_s4 }
 0xb33   :  { %v642_v20 = vpop.permute.xlu0 %641 }
 0xb34   :  { %1360 = vmatmul.mubr.msk.f32.vlgmr.msra.gmra.mrb[4].mxu0 %vm215_vm14, %v642_v20 }
 0xb35   :  { %1453 = vmatpush3.bf16.msra.mxu0 %v1812_v14  ;;  %1381 = vmatprep.mubr.msk.f32.mxu0 %vm1672_vm0, %v1673_v2 }
 0xb36   :  { %1454 = vmatprep.subr.bf16.mxu0 %v1671_v0 }
 0xb39   :  { %1456 = vmatpush3.bf16.msra.mxu0 %v1821_v22 }
 0xb3a   :  { %1463 = vmatprep.subr.bf16.mxu0 %v1671_v0 }
 0xc07   :  { %v711_v21 = vpop.f32.mrb[4].mxu0 }
 0xc08   :  { %v712_v23 = vadd.f32 %v711_v21, %v1868_v43  ;;  %v1361_v24 = vpop.f32.mrb[5].mxu0 }
 0xc0a   :  { %v716_v25 = vrot.slane %v712_v23, 4 }
 0xc0c   :  { %v718_v26 = vadd.f32 %v716_v25, %v1872_v47  ;;  %725 = vrot.lane.b32.xlu1 %v716_v25, %s1674_s15 }
 0xc0e   :  { %v1231_v27 = vmul.f32 -1.442695, %v718_v26 }
 0xc10   :  { %1507 = vpow2.f32 %v1231_v27 }
 0xc1a   :  { %v1508_v28 = vpop.eup %1507 }
 0xc1b   :  { %v722_v29 = vadd.f32 1.0, %v1508_v28 }
 0xc1d   :  { %1509 = vrcp.f32 %v722_v29 }
 0xc27   :  { %v1510_v30 = vpop.eup %1509 }
 0xc28   :  { %v735_v36 = vsub.f32 1.0, %v1510_v30  ;;  %v743_v39 = vmul.f32 %v1510_v30, %v741_v37 }
 0xc7e   :  { %v726_v31 = vpop.permute.xlu1 %725 }
 0xc7f   :  { %v728_v32 = vmul.f32 %v1510_v30, %v726_v31 }
 0xc81   :  { %730 = vrot.lane.b32.xlu0 %v728_v32, %s1674_s15 }
 0xcf3   :  { %v731_v33 = vpop.permute.xlu0 %730 }
 0xcf4   :  { %v733_v34 = vadd.f32 %v731_v33, %v1872_v47 }
 0xcf6   :  { %1511 = vtanh.f32 %v733_v34 }
 0xd00   :  { %v1512_v35 = vpop.eup %1511 }
 0xd01   :  { %737 = vrot.lane.b32.xlu1 %v1512_v35, %s1675_s4 }
 0xd73   :  { %v738_v38 = vpop.permute.xlu1 %737 }
 0xd74   :  { %v740_v40 = vmul.f32 %v738_v38, %v735_v36 }
 0xd76   :  { %v744_v41 = vadd.f32 %v743_v39, %v740_v40 }
 0xd78   :  { %v1066_v42 = vsel %vm121_vm4, %v1065_v18, %v744_v41  ;;  %v746_v44 = vrot.slane %v744_v41, 4  ;;  %v847_v60 = vrot.slane %v744_v41, 7 }
 0xd7a   :  { %747 = vrot.lane.b32.xlu0 %v746_v44, %s1675_s4 }
 0xdec   :  { %v748_v45 = vpop.permute.xlu0 %747 }
 0xded   :  { %1371 = vmatmul.mubr.msk.f32.vlgmr.msra.gmra.mrb[6].mxu1 %vm215_vm14, %v748_v45  ;;  %v1071_v45 = vld [vmem:[#allocation9 + $0x8] sm:$0xff] }
 0xdee   :  { %1459 = vmatpush3.bf16.msra.mxu1 %v1812_v14  ;;  %1392 = vmatprep.mubr.msk.f32.mxu1 %vm1672_vm0, %v1673_v2 }
 0xdef   :  { %1460 = vmatprep.subr.bf16.mxu1 %v1671_v0 }
 0xdf2   :  { %1462 = vmatpush3.bf16.msra.mxu1 %v1821_v22 }
 0xec0   :  { %v817_v46 = vpop.f32.mrb[6].mxu1 }
 0xec1   :  { %v818_v48 = vadd.f32 %v817_v46, %v1868_v43  ;;  %v1372_v49 = vpop.f32.mrb[7].mxu1  ;;  %v1072_v46 = vld [vmem:[#allocation9 + $0x10] sm:$0xff] }
 0xec2   :  { %v1073_v49 = vld [vmem:[#allocation9 + $0x18] sm:$0xff] }
 0xec3   :  { %v822_v50 = vrot.slane %v818_v48, 3 }
 0xec5   :  { %v824_v51 = vadd.f32 %v822_v50, %v1872_v47  ;;  %831 = vrot.lane.b32.xlu1 %v822_v50, %s1674_s15  ;;  %v1467_v50 = vpack.c.bf16 %v1073_v49, %v1072_v46 }
 0xec7   :  { %v1233_v52 = vmul.f32 -1.442695, %v824_v51 }
 0xec9   :  { %1513 = vpow2.f32 %v1233_v52 }
 0xed3   :  { %v1514_v53 = vpop.eup %1513 }
 0xed4   :  { %v828_v14 = vadd.f32 1.0, %v1514_v53 }
 0xed6   :  { %1515 = vrcp.f32 %v828_v14 }
 0xee0   :  { %v1516_v54 = vpop.eup %1515 }
 0xee1   :  { %v841_v59 = vsub.f32 1.0, %v1516_v54  ;;  %v849_v62 = vmul.f32 %v1516_v54, %v847_v60 }
 0xf37   :  { %v832_v55 = vpop.permute.xlu1 %831 }
 0xf38   :  { %v834_v56 = vmul.f32 %v1516_v54, %v832_v55 }
 0xf3a   :  { %836 = vrot.lane.b32.xlu0 %v834_v56, %s1674_s15 }
 0xfac   :  { %v837_v22 = vpop.permute.xlu0 %836 }
 0xfad   :  { %v839_v57 = vadd.f32 %v837_v22, %v1872_v47 }
 0xfaf   :  { %1517 = vtanh.f32 %v839_v57 }
 0xfb9   :  { %v1518_v58 = vpop.eup %1517 }
 0xfba   :  { %843 = vrot.lane.b32.xlu1 %v1518_v58, %s1675_s4 }
0x102c   :  { %v844_v61 = vpop.permute.xlu1 %843 }
0x102d   :  { %v846_v63 = vmul.f32 %v844_v61, %v841_v59 }
0x102f   :  { %v850_v4 = vadd.f32 %v849_v62, %v846_v63 }
0x1031   :  { %v852_v5 = vrot.slane %v850_v4, 5  ;;  %v1067_v6 = vsel %vm123_vm7, %v1066_v42, %v850_v4  ;;  %v953_v23 = vrot.slane %v850_v4, 7 }
0x1033   :  { %853 = vrot.lane.b32.xlu0 %v852_v5, %s1675_s4 }
0x10a5   :  { %v854_v7 = vpop.permute.xlu0 %853 }
0x10a6   :  { %1382 = vmatmul.mubr.msk.f32.vlgmr.msra.gmra.mrb[6].mxu0 %vm215_vm14, %v854_v7 }
0x10a7   :  { %1403 = vmatprep.mubr.msk.f32.mxu0 %vm1672_vm0, %v1673_v2  ;;  %vm1156_vm0 = vcmp.lt.s32.totalorder %v1801_v3, 48 }
0x1179   :  { %v923_v8 = vpop.f32.mrb[6].mxu0 }
0x117a   :  { %v924_v1 = vadd.f32 %v923_v8, %v1868_v43  ;;  %v1383_v9 = vpop.f32.mrb[7].mxu0 }
0x117c   :  { %v928_v10 = vrot.slane %v924_v1, 2 }
0x117e   :  { %v930_v11 = vadd.f32 %v928_v10, %v1872_v47  ;;  %937 = vrot.lane.b32.xlu1 %v928_v10, %s1674_s15 }
0x1180   :  { %v1235_v12 = vmul.f32 -1.442695, %v930_v11 }
0x1182   :  { %1519 = vpow2.f32 %v1235_v12 }
0x118c   :  { %v1520_v13 = vpop.eup %1519 }
0x118d   :  { %v934_v15 = vadd.f32 1.0, %v1520_v13 }
0x118f   :  { %1521 = vrcp.f32 %v934_v15 }
0x1199   :  { %v1522_v16 = vpop.eup %1521 }
0x119a   :  { %v947_v21 = vsub.f32 1.0, %v1522_v16  ;;  %v955_v25 = vmul.f32 %v1522_v16, %v953_v23 }
0x11f0   :  { %v938_v17 = vpop.permute.xlu1 %937 }
0x11f1   :  { %v940_v18 = vmul.f32 %v1522_v16, %v938_v17 }
0x11f3   :  { %942 = vrot.lane.b32.xlu0 %v940_v18, %s1674_s15 }
0x1265   :  { %v943_v2 = vpop.permute.xlu0 %942 }
0x1266   :  { %v945_v19 = vadd.f32 %v943_v2, %v1872_v47 }
0x1268   :  { %1523 = vtanh.f32 %v945_v19 }
0x1272   :  { %v1524_v20 = vpop.eup %1523 }
0x1273   :  { %949 = vrot.lane.b32.xlu1 %v1524_v20, %s1675_s4 }
0x12e5   :  { %v950_v24 = vpop.permute.xlu1 %949 }
0x12e6   :  { %v952_v26 = vmul.f32 %v950_v24, %v947_v21 }
0x12e8   :  { %v956_v27 = vadd.f32 %v955_v25, %v952_v26 }
0x12ea   :  { %v958_v28 = vrot.slane %v956_v27, 6  ;;  %v1068_v29 = vsel %vm125_vm15, %v1067_v6, %v956_v27  ;;  %v1059_v53 = vrot.slane %v956_v27, 7 }
0x12ec   :  { %959 = vrot.lane.b32.xlu0 %v958_v28, %s1675_s4 }
0x135e   :  { %v960_v30 = vpop.permute.xlu0 %959 }
0x135f   :  { %1393 = vmatmul.mubr.msk.f32.vlgmr.msra.gmra.mrb[8].mxu1 %vm215_vm14, %v960_v30 }
0x1432   :  { %v1029_v31 = vpop.f32.mrb[8].mxu1 }
0x1433   :  { %v1030_v32 = vadd.f32 %v1029_v31, %v1868_v43  ;;  %v1394_v33 = vpop.f32.mrb[9].mxu1  ;;  %v1070_v43 = vld [vmem:[#allocation9] sm:$0xff] }
0x1434   :  { %v1464_v48 = vpack.c.bf16 %v1071_v45, %v1070_v43 }
0x1435   :  { %v1034_v34 = vrot.slane %v1030_v32, 1 }
0x1436   :  { %1465 = vmatpush3.bf16.msra.mxu0 %v1464_v48 }
0x1437   :  { %v1036_v35 = vadd.f32 %v1034_v34, %v1872_v47  ;;  %1043 = vrot.lane.b32.xlu1 %v1034_v34, %s1674_s15  ;;  %1466 = vmatprep.subr.bf16.mxu0 %v1671_v0  ;;  %v1238_v0 = vld [vmem:[%s2016_s6] ss:$0 sm:$0xff]  ;;  %s1611_s6 = scalar_lea.vmem %s1193_s20, 16 }
0x1438   :  { %p1612_p13 = scmp.ne.s32.totalorder %s1193_s20, %s1611_s6  ;;  %p1617_p1 = scmp.lt.s32.totalorder %s1615_s21, %s1611_s6 }
0x1439   :  { %v1237_v36 = vmul.f32 -1.442695, %v1036_v35 }
0x143a   :  { %1468 = vmatpush3.bf16.msra.mxu0 %v1467_v50  ;;  %p1618_p2 = por %p1617_p1, %p1616_p0 }
0x143b   :  { %1525 = vpow2.f32 %v1237_v36 }
0x143c   :  { %p1619_p3 = pnand %p1618_p2, %p1612_p13 }
0x1445   :  { %v1526_v37 = vpop.eup %1525 }
0x1446   :  { %v1040_v38 = vadd.f32 1.0, %v1526_v37 }
0x1448   :  { %1527 = vrcp.f32 %v1040_v38 }
0x1452   :  { %v1528_v39 = vpop.eup %1527 }
0x1453   :  { %v1053_v52 = vsub.f32 1.0, %v1528_v39  ;;  %v1061_v54 = vmul.f32 %v1528_v39, %v1059_v53 }
0x14a9   :  { %v1044_v40 = vpop.permute.xlu1 %1043 }
0x14aa   :  { %v1046_v41 = vmul.f32 %v1528_v39, %v1044_v40 }
0x14ac   :  { %1048 = vrot.lane.b32.xlu0 %v1046_v41, %s1674_s15 }
0x151e   :  { %v1049_v42 = vpop.permute.xlu0 %1048 }
0x151f   :  { %v1051_v44 = vadd.f32 %v1049_v42, %v1872_v47 }
0x1521   :  { %1529 = vtanh.f32 %v1051_v44 }
0x152b   :  { %v1530_v51 = vpop.eup %1529 }
0x152c   :  { %1055 = vrot.lane.b32.xlu1 %v1530_v51, %s1675_s4 }
0x159e   :  { %v1056_v14 = vpop.permute.xlu1 %1055 }
0x159f   :  { %v1058_v55 = vmul.f32 %v1056_v14, %v1053_v52 }
0x15a1   :  { %v1062_v47 = vadd.f32 %v1061_v54, %v1058_v55 }
0x15a3   :  { %v1069_v56 = vsel %vm127_vm5, %v1068_v29, %v1062_v47 }
0x15a4   :  { %1082 = vrot.lane.b32.xlu0 %v1069_v56, %s1675_s4 }
0x1616   :  { %v1083_v22 = vpop.permute.xlu0 %1082 }
0x1617   :  { %1404 = vmatmul.mubr.msk.f32.vlgmr.msra.gmra.mrb[8].mxu0 %vm215_vm14, %v1083_v22 }
0x16ea   :  { %v1152_v57 = vpop.f32.mrb[8].mxu0 }
0x16eb   :  { %v1153_v58 = vadd.f32 %v1238_v0, %v1152_v57  ;;  %v1405_v59 = vpop.f32.mrb[9].mxu0 }
0x16ed   :  { %v1157_v60 = vsel %vm1156_vm0, %v1153_v58, -1e+30 }
0x16ee   :  { %1158 = vmax.xlane.f32.xlu1 %v1157_v60 }
0x177b   :  { %v1159_v61 = vpop.xlane.xlu1 %1158 }
0x177c   :  { %v1160_v62 = vsub.f32 %v1157_v60, %v1159_v61 }
0x177e   :  { %v1161_v63 = vmul.f32 1.442695, %v1160_v62 }
0x1780   :  { %1531 = vpow2.f32 %v1161_v63 }
0x178a   :  { %v1532_v4 = vpop.eup %1531 }
0x178b   :  { %1163 = vadd.xlane.f32.xlu0 %v1532_v4 }
0x17a1   :  { %1171 = vrot.lane.b32.xlu0 %v1062_v47, %s1675_s4 }
0x1818   :  { %v1164_v5 = vpop.xlane.xlu0 %1163 }
0x1819   :  { %1533 = vlog2.f32 %v1164_v5 }
0x181c   :  { %v1172_v6 = vpop.permute.xlu0 %1171 }
0x181d   :  { %1175 = vst.msk [vmem:[#allocation11 - $0x7] sm:$0x80] %vm1174_vm1, %v1172_v6 }
0x181e   :  { %1622 = shalt.err (!%p1619_p3)
}
0x181f   :  { %s1623_s23 = scalar_lea.hbm %s2018_s8, 16 }
0x1820   :  { %p1624_p4 = scmp.ne.s32.totalorder %s2018_s8, %s1623_s23  ;;  %p1627_p5 = scmp.lt.u32.totalorder %s1623_s23, %s2018_s8 }
0x1822   :  { %p1629_p6 = pnand %p1627_p5, %p1624_p4 }
0x1824   :  { %1632 = shalt.err (!%p1629_p6)
}
0x1825   :  { %1195 = dma.vmem_to_hbm [thread:$0]  %s1193_s20, 16, %s2018_s8, [#allocation12]   ;;  %v1534_v3 = vpop.eup %1533 }
0x1826   :  { %v1166_v7 = vmul.f32 0.6931472, %v1534_v3  ;;  %s1678_s30 = smov [#allocation10]  }
0x1827   :  { %s1182_s5 = sshll.u32 %s1678_s30, 4  ;;  %s1183_s5 = int_to_ptr.vmem [resolvable:$true] %s1182_s5 }
0x1828   :  { %v1167_v8 = vadd.f32 %v1166_v7, %v1159_v61  ;;  %s1633_s26 = scalar_lea.vmem %s1183_s5, 128  ;;  %p1638_p8 = scmp.lt.s32.totalorder %s1183_s5, %s1183_s5 }
0x1829   :  { %p1634_p7 = scmp.ne.s32.totalorder %s1183_s5, %s1633_s26  ;;  %p1639_p9 = scmp.lt.s32.totalorder %s1633_s26, %s1633_s26 }
0x182a   :  { %v1168_v1 = vsub.f32 %v1157_v60, %v1167_v8 }
0x182b   :  { %p1640_p10 = por %p1639_p9, %p1638_p8 }
0x182c   :  { %1169 = vst [vmem:[#allocation10] sm:$0xff] %v1168_v1 }
0x182d   :  { %p1641_p11 = pnand %p1640_p10, %p1634_p7 }
0x182f   :  { %1644 = shalt.err (!%p1641_p11)
}
0x1830   :  { %s1645_s10 = scalar_lea.hbm %s2017_s7, 128 }
0x1831   :  { %p1646_p12 = scmp.ne.s32.totalorder %s2017_s7, %s1645_s10  ;;  %p1649_p13 = scmp.lt.u32.totalorder %s1645_s10, %s2017_s7 }
0x1833   :  { %p1651_p0 = pnand %p1649_p13, %p1646_p12 }
0x1835   :  { %1654 = shalt.err (!%p1651_p0)
}
0x1836   :  { %1185 = dma.vmem_to_hbm [thread:$0]  %s1183_s5, 128, %s2017_s7, [#allocation6]  }
0x1837   :  { %1661 = dma.done.wait [#allocation6], 128  }
0x1838   :  { %1662 = vsyncadd [#allocation6], 4294967168 }
0x1839   :  { %1663 = dma.done.wait [#allocation12], 16  }
0x183a   :  { %1664 = vsyncadd [#allocation12], 4294967280 }
0x183b   :  { %1202 = vsyncpa [#allocation5], 1 }
0x183c   :  { %1203 = vsyncpa [#allocation8], 1 }
0x183d   :  { %1204 = vsyncpa [#allocation6], 1 }
0x183e   :  { %1205 = vsyncpa [#allocation12], 1 }

</bundles_post_ra>
